<compile_context>
chip_gen: v6e
topology: v6e:2x2x1
jax: 0.10.0
libtpu: 0.0.40
codegen_flags: <defaults>
</compile_context>

<pallas_src>
import math
import functools

import jax
import jax.numpy as jnp
from jax.experimental import pallas as pl
from jax.experimental.pallas import tpu as pltpu


# ----------------------------------------------------------------------------
# small helpers
# ----------------------------------------------------------------------------
def _round_up(x, m):
    return ((x + m - 1) // m) * m


def _shift_cols(y, off):
    """result[:, m] = y[:, m + off]; zero-filled where m + off is out of range."""
    if off == 0:
        return y
    rows = y.shape[0]
    z = jnp.zeros((rows, abs(off)), y.dtype)
    if off > 0:
        return jnp.concatenate([y[:, off:], z], axis=1)
    return jnp.concatenate([z, y[:, :off]], axis=1)


def _gelu_exact(v):
    # Exact (erf-based) GELU to match torch.nn.functional.gelu; erf via
    # Abramowitz & Stegun 7.1.26 (|err| < 1.5e-7), built only from exp/div so it
    # lowers cleanly onto the EUP.
    z = v * 0.7071067811865476
    a = jnp.abs(z)
    t = 1.0 / (1.0 + 0.3275911 * a)
    poly = t * (0.254829592 + t * (-0.284496736 + t * (1.421413741
                + t * (-1.453152027 + t * 1.061405429))))
    erf_a = 1.0 - poly * jnp.exp(-(a * a))
    erf = jnp.where(z >= 0, erf_a, -erf_a)
    return 0.5 * v * (1.0 + erf)


# ----------------------------------------------------------------------------
# Kernel 1: generic  out = W @ X + b  (used for the SDlayer band convs after a
# wrapper-side im2col gather).  Gridded over lane tiles of X.
# ----------------------------------------------------------------------------
def matmul_bias_kernel(w_ref, x_ref, b_ref, o_ref):
    o_ref[...] = (jnp.dot(w_ref[...], x_ref[...],
                          preferred_element_type=jnp.float32) + b_ref[...])


def sd_band_conv(xpad, w2, b, stride, kernel):
    """Conv2d((K,1), stride (S,1), no pad) on a frequency-padded band.

    xpad: (B, Cin, Fpad, T)  ->  (B, Cout, Fout, T)
    """
    B, Cin, Fpad, T = xpad.shape
    Cout = w2.shape[0]
    K = kernel
    Fout = (Fpad - K) // stride + 1

    # im2col gather (plain-JAX glue): contraction index = cin*K + dk,
    # lane index = (b, f, t) row-major.
    taps = [xpad[:, :, dk: dk + stride * (Fout - 1) + 1: stride, :]
            for dk in range(K)]
    xg = jnp.stack(taps, axis=2)                       # (B, Cin, K, Fout, T)
    xg = xg.transpose(1, 2, 0, 3, 4).reshape(Cin * K, B * Fout * T)

    M = B * Fout * T
    tile_m = min(512, _round_up(M, 128))
    Mp = _round_up(M, tile_m)
    if Mp != M:
        xg = jnp.pad(xg, ((0, 0), (0, Mp - M)))

    out = pl.pallas_call(
        matmul_bias_kernel,
        out_shape=jax.ShapeDtypeStruct((Cout, Mp), jnp.float32),
        grid=(Mp // tile_m,),
        in_specs=[pl.BlockSpec((Cout, Cin * K), lambda j: (0, 0)),
                  pl.BlockSpec((Cin * K, tile_m), lambda j: (0, j)),
                  pl.BlockSpec((Cout, 1), lambda j: (0, 0))],
        out_specs=pl.BlockSpec((Cout, tile_m), lambda j: (0, j)),
        compiler_params=pltpu.CompilerParams(
            dimension_semantics=("parallel",),
            vmem_limit_bytes=32 * 1024 * 1024),
    )(w2, xg, b)
    return out[:, :M].reshape(Cout, B, Fout, T).transpose(1, 0, 2, 3)


# ----------------------------------------------------------------------------
# Kernel 2: ConvolutionModule (+ fused exact GELU).
#
# Data layout inside the kernel: (C, Ntile * Tp) with Tp = T + 2*pad; each
# sample owns a contiguous stripe of Tp lanes whose first/last `pad` columns
# are zero halos.  Time convs become lane shifts + one matmul with contraction
# K*C; GroupNorm stats use a per-sample selector mask; halo columns are
# re-zeroed after every bias add so the zero-padding invariant holds.
# ----------------------------------------------------------------------------
def conv_module_kernel(x_ref, gn1g_ref, gn1b_ref, wa_ref, ba_ref, wg_ref,
                       bg_ref, dww_ref, dwb_ref, gn2g_ref, gn2b_ref,
                       pww_ref, pwb_ref, o_ref, *, depth, n_tile, t_len, pad):
    C = x_ref.shape[1]
    H = dww_ref.shape[1]
    K = dww_ref.shape[2]
    t_pad = t_len + 2 * pad
    M = n_tile * t_pad
    eps = 1e-5

    x = x_ref[0]                                          # (C, M)

    # Hoisted constants (built once, reused across the unrolled depth loop).
    col = jax.lax.broadcasted_iota(jnp.int32, (n_tile, M), 1)
    row = jax.lax.broadcasted_iota(jnp.int32, (n_tile, M), 0)
    selT = (col // t_pad == row).astype(jnp.float32)      # (n_tile, M)
    tpos = jax.lax.broadcasted_iota(jnp.int32, (1, M), 1) % t_pad
    interior = ((tpos >= pad) & (tpos < pad + t_len)).astype(jnp.float32)

    inv_ct = 1.0 / (C * t_len)
    inv_ht = 1.0 / (H * t_len)

    def group_norm(y, gamma, beta, inv_cnt):
        # single-pass stats; halo columns of y are zero so they do not perturb
        # the sums (count uses the true C*T / H*T element count).
        cs = jnp.sum(y, axis=0, keepdims=True)                       # (1, M)
        cs2 = jnp.sum(y * y, axis=0, keepdims=True)
        s1 = jnp.sum(cs * selT, axis=1, keepdims=True)               # (n, 1)
        s2 = jnp.sum(cs2 * selT, axis=1, keepdims=True)
        mean = s1 * inv_cnt
        var = s2 * inv_cnt - mean * mean
        rstd = jax.lax.rsqrt(var + eps)
        mean_c = jnp.sum(mean * selT, axis=0, keepdims=True)         # (1, M)
        rstd_c = jnp.sum(rstd * selT, axis=0, keepdims=True)
        return ((y - mean_c) * rstd_c * gamma + beta) * interior

    def im2col(y):
        # rows ordered tap-major, channel-minor: index = dk*C + c
        return jnp.concatenate(
            [_shift_cols(y, dk - pad) for dk in range(K)], axis=0)

    for d in range(depth):
        y = group_norm(x, gn1g_ref[d], gn1b_ref[d], inv_ct)
        xcol = im2col(y)                                             # (K*C, M)
        # GLU as two dedicated matmuls (no mid-sublane channel split).
        a = jnp.dot(wa_ref[d], xcol, preferred_element_type=jnp.float32) + ba_ref[d]
        g = jnp.dot(wg_ref[d], xcol, preferred_element_type=jnp.float32) + bg_ref[d]
        y = (a * jax.nn.sigmoid(g)) * interior                       # (H, M)
        # depthwise conv: K fused multiply-adds on the VPU.
        wd = dww_ref[d]                                              # (H, K)
        z = wd[:, pad:pad + 1] * y
        for dk in range(K):
            if dk != pad:
                z = z + wd[:, dk:dk + 1] * _shift_cols(y, dk - pad)
        y = (z + dwb_ref[d]) * interior
        y = group_norm(y, gn2g_ref[d], gn2b_ref[d], inv_ht)
        y = y * jax.nn.sigmoid(y)                                    # Swish
        y = (jnp.dot(pww_ref[d], y, preferred_element_type=jnp.float32)
             + pwb_ref[d]) * interior
        x = x + y                                                    # residual
    o_ref[0] = _gelu_exact(x) * interior


def conv_module_gelu(band, cm, n_tile_target=32):
    """ConvolutionModule along time + fused GELU.  band: (B, C, Fb, T)."""
    B, C, Fb, T = band.shape
    depth = cm["wa"].shape[0]
    K = cm["dw_w"].shape[2]
    pad = K // 2
    Tp = T + 2 * pad
    N = B * Fb
    n_tile = min(n_tile_target, N)
    Npad = _round_up(N, n_tile)
    ngroups = Npad // n_tile
    M = n_tile * Tp

    # (B, C, Fb, T) -> halo-stripe layout (ngroups, C, n_tile*Tp)   [glue]
    flat = band.transpose(0, 2, 1, 3).reshape(N, C, T)
    flat = jnp.pad(flat, ((0, Npad - N), (0, 0), (pad, pad)))
    xin = (flat.reshape(ngroups, n_tile, C, Tp)
               .transpose(0, 2, 1, 3).reshape(ngroups, C, M))

    kernel = functools.partial(conv_module_kernel, depth=depth,
                               n_tile=n_tile, t_len=T, pad=pad)
    args = (xin, cm["gn1_w"], cm["gn1_b"], cm["wa"], cm["ba"], cm["wg"],
            cm["bg"], cm["dw_w"], cm["dw_b"], cm["gn2_w"], cm["gn2_b"],
            cm["pw_w"], cm["pw_b"])
    in_specs = ([pl.BlockSpec((1, C, M), lambda j: (j, 0, 0))] +
                [pl.BlockSpec(a.shape, lambda j: (0, 0, 0)) for a in args[1:]])

    out = pl.pallas_call(
        kernel,
        out_shape=jax.ShapeDtypeStruct((ngroups, C, M), jnp.float32),
        grid=(ngroups,),
        in_specs=in_specs,
        out_specs=pl.BlockSpec((1, C, M), lambda j: (j, 0, 0)),
        compiler_params=pltpu.CompilerParams(
            dimension_semantics=("parallel",),
            vmem_limit_bytes=32 * 1024 * 1024),
    )(*args)

    out = (out.reshape(ngroups, C, n_tile, Tp)
              .transpose(0, 2, 1, 3).reshape(Npad, C, Tp))
    out = out[:N, :, pad:pad + T]                                   # (N, C, T)
    return out.reshape(B, Fb, C, T).transpose(0, 2, 1, 3)           # (B, C, Fb, T)


# ----------------------------------------------------------------------------
# Kernel 3: global KxK Conv2d, stride 1, pad (K-1)//2.
# Layout: (C, (F+2p)*(T+2p)) per batch — frequency stripes of padded width so
# both F and T taps are plain lane shifts; one matmul with contraction K*K*C.
# ----------------------------------------------------------------------------
def global_conv_kernel(x_ref, w_ref, b_ref, o_ref, *, t_pad, ksize):
    x = x_ref[0]                                          # (C, Wd)
    half = ksize // 2
    cols = []
    for kf in range(ksize):
        for kt in range(ksize):
            off = (kf - half) * t_pad + (kt - half)
            cols.append(_shift_cols(x, off))
    xcol = jnp.concatenate(cols, axis=0)                  # (K*K*C, Wd)
    o_ref[0] = (jnp.dot(w_ref[...], xcol,
                        preferred_element_type=jnp.float32) + b_ref[...])


def global_conv(x, w9, b, ksize=3):
    # TODO(synk): for production-sized F/T, add a halo-overlapping BlockSpec
    # over the frequency stripes instead of one whole-batch block per grid step.
    B, C, F, T = x.shape
    Cout = w9.shape[0]
    pad = (ksize - 1) // 2
    Tp = T + 2 * pad
    Wd = (F + 2 * pad) * Tp
    xp = jnp.pad(x, ((0, 0), (0, 0), (pad, pad), (pad, pad))).reshape(B, C, Wd)

    out = pl.pallas_call(
        functools.partial(global_conv_kernel, t_pad=Tp, ksize=ksize),
        out_shape=jax.ShapeDtypeStruct((B, Cout, Wd), jnp.float32),
        grid=(B,),
        in_specs=[pl.BlockSpec((1, C, Wd), lambda j: (j, 0, 0)),
                  pl.BlockSpec((Cout, ksize * ksize * C), lambda j: (0, 0)),
                  pl.BlockSpec((Cout, 1), lambda j: (0, 0))],
        out_specs=pl.BlockSpec((1, Cout, Wd), lambda j: (j, 0, 0)),
        compiler_params=pltpu.CompilerParams(
            dimension_semantics=("parallel",),
            vmem_limit_bytes=32 * 1024 * 1024),
    )(xp, w9, b)
    out = out.reshape(B, Cout, F + 2 * pad, Tp)[:, :, pad:pad + F, pad:pad + T]
    return out


# ----------------------------------------------------------------------------
# SDblock forward
# ----------------------------------------------------------------------------
def sdblock_forward(x, params, band_configs):
    B, C_in, Fr, T = x.shape
    SR_low = band_configs["low"]["SR"]
    SR_mid = band_configs["mid"]["SR"]
    splits = [(0, math.ceil(Fr * SR_low)),
              (math.ceil(Fr * SR_low), math.ceil(Fr * (SR_low + SR_mid))),
              (math.ceil(Fr * (SR_low + SR_mid)), Fr)]

    # --- SDlayer: per-band strided frequency conv ---------------------------
    bands, original_lengths = [], []
    for p, (start, end) in zip(params["sd"], splits):
        stride, kernel = p["stride"], p["kernel"]
        extracted = x[:, :, start:end, :]
        cur = end - start
        original_lengths.append(cur)
        if stride == 1:
            total_padding = kernel - stride
        else:
            total_padding = (stride - cur % stride) % stride
        pad_left = total_padding // 2
        padded = jnp.pad(extracted, ((0, 0), (0, 0),
                                     (pad_left, total_padding - pad_left),
                                     (0, 0)))
        bands.append(sd_band_conv(padded, p["w"], p["b"], stride, kernel))

    # --- per-band ConvolutionModule (+ fused GELU) ---------------------------
    outs, lengths = [], []
    for cm, band in zip(params["cm"], bands):
        lengths.append(band.shape[2])
        outs.append(conv_module_gelu(band, cm))

    full_band = jnp.concatenate(outs, axis=2)
    skip = full_band
    output = global_conv(full_band, params["g_w"], params["g_b"])
    return output, skip, lengths, original_lengths


# ----------------------------------------------------------------------------
# Parameter init (PyTorch-like shapes) + packing into kernel layouts
# ----------------------------------------------------------------------------
def init_sdblock_params(key, channels_in, channels_out, band_configs, depths,
                        compress=4, conv_kernel=3, global_kernel=3):
    hidden = int(channels_out / compress)
    keys = iter(jax.random.split(key, 128))

    def nrm(shape, scale=0.1):
        return scale * jax.random.normal(next(keys), shape, jnp.float32)

    params = {"sd": [], "cm": []}
    for cfg in band_configs.values():
        params["sd"].append({
            "w": nrm((channels_out, channels_in, cfg["kernel"])),
            "b": nrm((channels_out,)),
            "stride": cfg["stride"], "kernel": cfg["kernel"],
        })
    for d in depths:
        params["cm"].append({
            "gn1_w": jnp.ones((d, channels_out), jnp.float32),
            "gn1_b": jnp.zeros((d, channels_out), jnp.float32),
            "c1_w": nrm((d, 2 * hidden, channels_out, conv_kernel)),
            "c1_b": nrm((d, 2 * hidden)),
            "dw_w": nrm((d, hidden, conv_kernel)),
            "dw_b": nrm((d, hidden)),
            "gn2_w": jnp.ones((d, hidden), jnp.float32),
            "gn2_b": jnp.zeros((d, hidden), jnp.float32),
            "pw_w": nrm((d, channels_out, hidden)),
            "pw_b": nrm((d, channels_out)),
        })
    params["g_w"] = nrm((channels_out, channels_out, global_kernel, global_kernel))
    params["g_b"] = nrm((channels_out,))
    return params


def pack_sdblock_params(params):
    # TODO(synk): optionally cast matmul operands to bf16 here for v6e/v7x; kept
    # f32 end-to-end for exact numerical parity with the PyTorch reference.
    packed = {"sd": [], "cm": []}
    for p in params["sd"]:
        cout, cin, k = p["w"].shape
        packed["sd"].append({
            "w": p["w"].reshape(cout, cin * k),
            "b": p["b"].reshape(cout, 1),
            "stride": p["stride"], "kernel": p["kernel"],
        })
    for cm in params["cm"]:
        d, two_h, C, K = cm["c1_w"].shape
        H = two_h // 2
        wa = cm["c1_w"][:, :H].transpose(0, 1, 3, 2).reshape(d, H, K * C)
        wg = cm["c1_w"][:, H:].transpose(0, 1, 3, 2).reshape(d, H, K * C)
        packed["cm"].append({
            "gn1_w": cm["gn1_w"][..., None], "gn1_b": cm["gn1_b"][..., None],
            "wa": wa, "ba": cm["c1_b"][:, :H, None],
            "wg": wg, "bg": cm["c1_b"][:, H:, None],
            "dw_w": cm["dw_w"], "dw_b": cm["dw_b"][..., None],
            "gn2_w": cm["gn2_w"][..., None], "gn2_b": cm["gn2_b"][..., None],
            "pw_w": cm["pw_w"], "pw_b": cm["pw_b"][..., None],
        })
    cg, _, kg, _ = params["g_w"].shape
    packed["g_w"] = params["g_w"].transpose(0, 2, 3, 1).reshape(cg, kg * kg * cg)
    packed["g_b"] = params["g_b"].reshape(cg, 1)
    return packed


if __name__ == "__main__":
    B, C_IN, C_OUT, FR, T = 2, 4, 16, 16, 16
    band_configs = {
        "low":  {"SR": 0.25, "stride": 1, "kernel": 3},
        "mid":  {"SR": 0.50, "stride": 2, "kernel": 2},
        "high": {"SR": 0.25, "stride": 2, "kernel": 2},
    }
    depths = [3, 2, 1]

    key = jax.random.PRNGKey(0)
    kp, kx = jax.random.split(key)
    raw_params = init_sdblock_params(kp, C_IN, C_OUT, band_configs, depths)
    params = pack_sdblock_params(raw_params)
    x = jax.random.normal(kx, (B, C_IN, FR, T), jnp.float32)

    output, skip, lengths, original_lengths = sdblock_forward(x, params, band_configs)
    jax.block_until_ready(output)
    jax.block_until_ready(skip)

    assert output.shape == (B, C_OUT, sum(lengths), T), output.shape
    assert skip.shape == output.shape
    assert bool(jnp.all(jnp.isfinite(output)))
    assert bool(jnp.all(jnp.isfinite(skip)))
    print("KERNEL_OK")
</pallas_src>

<mosaic_0001>
module attributes {stable_mosaic.version = 11 : i64} {
  func.func @matmul_bias_kernel(%arg0: i32, %arg1: memref<16x12xf32, #tpu.memory_space<vmem>>, %arg2: memref<12x128xf32, #tpu.memory_space<vmem>>, %arg3: memref<16x1xf32, #tpu.memory_space<vmem>>, %arg4: memref<16x128xf32, #tpu.memory_space<vmem>>) attributes {dimension_semantics = [#tpu.dimension_semantics<parallel>], iteration_bounds = array<i64: 1>, scalar_prefetch = 0 : i64, scratch_operands = 0 : i64, tpu.core_type = #tpu.core_type<tc>, window_params = [{pipeline_mode = #tpu.pipeline_mode<synchronous>, transform_indices = @transform_0, window_bounds = array<i64: 16, 12>}, {transform_indices = @transform_1, window_bounds = array<i64: 12, 128>}, {pipeline_mode = #tpu.pipeline_mode<synchronous>, transform_indices = @transform_2, window_bounds = array<i64: 16, 1>}, {transform_indices = @transform_3, window_bounds = array<i64: 16, 128>}]} {
    %c0 = arith.constant 0 : index
    %c0_0 = arith.constant 0 : index
    %0 = vector.load %arg1[%c0, %c0_0] : memref<16x12xf32, #tpu.memory_space<vmem>>, vector<16x12xf32>
    %c0_1 = arith.constant 0 : index
    %c0_2 = arith.constant 0 : index
    %1 = vector.load %arg2[%c0_1, %c0_2] : memref<12x128xf32, #tpu.memory_space<vmem>>, vector<12x128xf32>
    %cst = arith.constant dense<0.000000e+00> : vector<16x128xf32>
    %2 = tpu.matmul %0, %1, %cst {dimension_numbers = #tpu.dot_dimension_numbers<[1], [0], [0], [1], [0, 0, 1, 1], [], []>} : vector<16x12xf32>, vector<12x128xf32>, vector<16x128xf32> -> vector<16x128xf32>
    %c0_3 = arith.constant 0 : index
    %c0_4 = arith.constant 0 : index
    %3 = vector.load %arg3[%c0_3, %c0_4] : memref<16x1xf32, #tpu.memory_space<vmem>>, vector<16x1xf32>
    %4 = vector.broadcast %3 : vector<16x1xf32> to vector<16x128xf32>
    %5 = arith.addf %2, %4 : vector<16x128xf32>
    %c0_5 = arith.constant 0 : index
    %c0_6 = arith.constant 0 : index
    %6 = vector.load %arg4[%c0_5, %c0_6] : memref<16x128xf32, #tpu.memory_space<vmem>>, vector<16x128xf32>
    tpu.vector_store %arg4[%c0_5, %c0_6], %5 {strides = array<i32>} : memref<16x128xf32, #tpu.memory_space<vmem>>, vector<16x128xf32>,
    return
  }
  func.func @transform_0(%arg0: i32) -> (i32, i32) {
    %c0_i32 = arith.constant 0 : i32
    %c0_i32_0 = arith.constant 0 : i32
    %c0_i32_1 = arith.constant 0 : i32
    return %c0_i32, %c0_i32_0 : i32, i32
  }
  func.func @transform_1(%arg0: i32) -> (i32, i32) {
    %c0_i32 = arith.constant 0 : i32
    %c0_i32_0 = arith.constant 0 : i32
    return %c0_i32, %arg0 : i32, i32
  }
  func.func @transform_2(%arg0: i32) -> (i32, i32) {
    %c0_i32 = arith.constant 0 : i32
    %c0_i32_0 = arith.constant 0 : i32
    %c0_i32_1 = arith.constant 0 : i32
    return %c0_i32, %c0_i32_0 : i32, i32
  }
  func.func @transform_3(%arg0: i32) -> (i32, i32) {
    %c0_i32 = arith.constant 0 : i32
    %c0_i32_0 = arith.constant 0 : i32
    return %c0_i32, %arg0 : i32, i32
  }
}

</mosaic_0001>

<bundles_post_ra>
// kernel: tpu_custom_call.1
= control target key start
LH: loop header
LB: loop body
LE: loop exit
PB: predicated region body
PF: predicated region fallthrough
CT: control target
= control target key end

     0   :  { %8 = vsyncpa [#allocation3], 0  ;;  %s263_s0 = inlined_call_operand.vmem [shape: f32[16,12], index: 0, kind: input, shape index: {}]   ;;  %s264_s1 = inlined_call_operand.hbm [shape: f32[12,128], index: 1, kind: input, shape index: {}]   ;;  %s265_s2 = inlined_call_operand.vmem [shape: f32[16,1], index: 2, kind: input, shape index: {}]   ;;  %s266_s3 = inlined_call_operand.hbm [shape: f32[16,128], index: 3, kind: output, shape index: {}]  }
   0x1   :  { %9 = vsyncpa [#allocation4], 0  ;;  %s214_s12 = smov [#allocation2]  }
   0x2   :  { %s17_s13 = sshll.u32 %s214_s12, 4  ;;  %s18_s13 = int_to_ptr.vmem [resolvable:$true] %s17_s13 }
   0x3   :  { %s178_s14 = scalar_lea.vmem %s18_s13, 256  ;;  %p183_p1 = scmp.lt.s32.totalorder %s18_s13, %s18_s13 }
   0x4   :  { %p179_p0 = scmp.ne.s32.totalorder %s18_s13, %s178_s14  ;;  %p184_p2 = scmp.lt.s32.totalorder %s178_s14, %s178_s14 }
   0x6   :  { %p185_p3 = por %p184_p2, %p183_p1 }
   0x8   :  { %p186_p4 = pnand %p185_p3, %p179_p0 }
   0xa   :  { %189 = shalt.err (!%p186_p4)
}
   0xb   :  { %s215_s15 = smov 128   ;;  %s216_s16 = smov 8  }
   0xc   :  { %23 = dma.hbm_to_vmem [thread:$0]  %s264_s1, 256, %s18_s13, [#allocation3], %s215_s15, %s215_s15, %s216_s16  }
   0xd   :  { %210 = dma.done.wait [#allocation3], 256  }
   0xe   :  { %211 = vsyncadd [#allocation3], 4294967040  ;;  %v217_v0 = vmov 0   ;;  %vm52_vm0 = vcmask 1043456   ;;  %vm45_vm1 = vcmask 97280   ;;  %v31_v2 = vld [vmem:[#allocation2] sm:$0xff] }
   0xf   :  { %169 = vset.pattern.permute.xlu0 %v217_v0  ;;  %v32_v1 = vld [vmem:[#allocation2 + $0x8] sm:$0xf]  ;;  %v29_v3 = vld [vmem:[%s263_s0] sm:$0xff]  ;;  %s218_s26 = smov [#allocation5]  }
  0x10   :  { %157 = vmatprep.subr.msk.mxu0 %vm52_vm0, %v32_v1  ;;  %161 = vmatprep.mubr.msk.f32.mxu0 %vm45_vm1, %v29_v3  ;;  %v33_v4 = vld [vmem:[%s265_s2] sm:$0xff]  ;;  %v30_v5 = vld [vmem:[%s263_s0 + $0x8] sm:$0xff]  ;;  %s138_s27 = sshll.u32 %s218_s26, 4  ;;  %s139_s27 = int_to_ptr.vmem [resolvable:$true] %s138_s27 }
  0x11   :  { %158 = vmatpush3.msk.msra.mxu0 %vm52_vm0, %v32_v1  ;;  %37 = vperm.xlu0 %169, %v33_v4   ;;  %v34_v6 = vld [vmem:[%s265_s2 + $0x8] sm:$0xff]  ;;  %s190_s0 = scalar_lea.vmem %s139_s27, 256  ;;  %p195_p6 = scmp.lt.s32.totalorder %s139_s27, %s139_s27 }
  0x12   :  { %159 = vmatprep.subr.mxu0 %v31_v2  ;;  %p191_p5 = scmp.ne.s32.totalorder %s139_s27, %s190_s0  ;;  %p196_p7 = scmp.lt.s32.totalorder %s190_s0, %s190_s0 }
  0x13   :  { %160 = vmatpush3.msra.mxu0 %v31_v2 }
  0x14   :  { %162 = vmatmul.mubr.msk.f32.vlgmr.msra.gmra.mxu0 %vm45_vm1, %v30_v5  ;;  %p197_p8 = por %p196_p7, %p195_p6 }
  0x15   :  { %42 = vperm.xlu0 %169, %v34_v6  }
  0x16   :  { %p198_p9 = pnand %p197_p8, %p191_p5 }
  0x8c   :  { %v38_v7 = vpop.permute.xlu0 %37 }
  0x90   :  { %v43_v8 = vpop.permute.xlu0 %42 }
  0xd4   :  { %v163_v9 = vpop.f32.mrf.mxu0 }
  0xd5   :  { %v128_v10 = vadd.f32 %v163_v9, %v43_v8 }
  0xd6   :  { %v122_v11 = vpop.f32.mrf.mxu0 }
  0xd7   :  { %132 = vst [vmem:[#allocation5 + $0x8] sm:$0xff] %v128_v10  ;;  %v123_v12 = vadd.f32 %v122_v11, %v38_v7 }
  0xd9   :  { %131 = vst [vmem:[#allocation5] sm:$0xff] %v123_v12 }
  0xda   :  { %201 = shalt.err (!%p198_p9)
}
  0xdb   :  { %144 = dma.vmem_to_hbm [thread:$0]  %s139_s27, 256, %s266_s3, [#allocation4], %s215_s15, %s215_s15, %s216_s16  }
  0xdc   :  { %212 = dma.done.wait [#allocation4], 256  }
  0xdd   :  { %213 = vsyncadd [#allocation4], 4294967040 }
  0xde   :  { %148 = vsyncpa [#allocation3], 1 }
  0xdf   :  { %149 = vsyncpa [#allocation4], 1 }

</bundles_post_ra>
